<compile_context>
chip_gen: v7x
topology: tpu7x:2x2x1
jax: 0.10.0
libtpu: 0.0.40
codegen_flags: <defaults>
</compile_context>

<pallas_src>
import functools

import jax
import jax.numpy as jnp
from jax.experimental import pallas as pl
from jax.experimental.pallas import tpu as pltpu

IN_F = 50        # fc1 input features
HID = 50         # fc1 output features (logical)
OUT = 10         # fc2 output classes (logical)
HID_PAD = 64     # padded hidden width (on-chip only; halves f32 MXU pad waste)
LANE = 128       # padded logits width (full vreg for the lane-axis reduce)
NEG_BIG = -1e30


def multi_lenet_o_kernel(x_ref, w1_ref, b1_ref, w2_ref, b2_ref, o_ref):
    x = x_ref[...]                                                  # [TB, 50]
    # fc1 + ReLU on a [TB, 64] on-chip intermediate.
    # Padded hidden columns are exactly 0 after ReLU (zero weight + zero bias)
    # and feed zero rows of w2, so they contribute nothing downstream.
    h = jnp.dot(x, w1_ref[...], preferred_element_type=jnp.float32) + b1_ref[...]
    h = jnp.maximum(h, 0.0)                                         # [TB, 64]
    # fc2: padded class columns carry bias -1e30, so exp underflows to 0 and
    # the lane-axis log_softmax over the full 128-wide vreg is exact.
    logits = jnp.dot(h, w2_ref[...], preferred_element_type=jnp.float32) + b2_ref[...]
    m = jnp.max(logits, axis=-1, keepdims=True)                     # [TB, 1]
    shifted = logits - m                                            # [TB, 128]
    lse = jnp.log(jnp.sum(jnp.exp(shifted), axis=-1, keepdims=True))
    # Store only the 10 real classes: narrow (masked) vst, but 12.8x less HBM
    # writeback than the padded slab and no wrapper slice afterwards.
    o_ref[...] = (shifted[:, :OUT] - lse).astype(o_ref.dtype)       # [TB, 10]


def prepare_params(w1, b1, w2, b2):
    """Pad parameters once (at load time) to TPU-friendly layouts.

    w1: [50, 50] -> [50, 64]    (zero-padded hidden columns)
    b1: [1, 50]  -> [1, 64]     (zero-padded)
    w2: [50, 10] -> [64, 128]   (zero-padded rows and columns)
    b2: [1, 10]  -> [1, 128]    (-1e30 in padded class columns)
    """
    w1p = jnp.zeros((IN_F, HID_PAD), jnp.float32).at[:, :HID].set(w1)
    b1p = jnp.zeros((1, HID_PAD), jnp.float32).at[:, :HID].set(b1)
    w2p = jnp.zeros((HID_PAD, LANE), jnp.float32).at[:HID, :OUT].set(w2)
    b2p = jnp.full((1, LANE), NEG_BIG, jnp.float32).at[:, :OUT].set(b2)
    return w1p, b1p, w2p, b2p


def _pick_tile(B, block_b):
    """Batch tile: as large as possible, multiple of 8, but keep >= ~8 grid
    steps for large B so v7x's two TensorCores each see several pipelined
    steps (harmless single-TC no-op on v5e/v6e)."""
    if B <= block_b:
        return B                                  # full extent: always legal
    tb = max(256, ((B // 8) // 8) * 8)            # ~8 steps, multiple of 8
    return min(block_b, tb)


@functools.partial(jax.jit, static_argnames=("block_b",))
def multi_lenet_o(x, w1p, b1p, w2p, b2p, block_b=2048):
    """x: [B, 50] f32; padded params from `prepare_params`. Returns [B, 10]."""
    B = x.shape[0]
    TB = _pick_tile(B, block_b)
    grid = (pl.cdiv(B, TB),)

    cost = pl.CostEstimate(
        # Padded MXU work actually issued.
        flops=2 * B * (IN_F * HID_PAD + HID_PAD * LANE),
        # exp over the full 128-wide shifted row + one log per row.
        transcendentals=B * (LANE + 1),
        # x read + resident weights + narrow 10-wide writeback.
        bytes_accessed=4 * (B * IN_F + w1p.size + b1p.size
                            + w2p.size + b2p.size + B * OUT),
    )

    out = pl.pallas_call(
        multi_lenet_o_kernel,
        out_shape=jax.ShapeDtypeStruct((B, OUT), jnp.float32),
        grid_spec=pltpu.PrefetchScalarGridSpec(
            num_scalar_prefetch=0,
            grid=grid,
            in_specs=[
                pl.BlockSpec((TB, IN_F), lambda i: (i, 0)),        # x tile: pipelined
                pl.BlockSpec((IN_F, HID_PAD), lambda i: (0, 0)),   # w1: VMEM-resident
                pl.BlockSpec((1, HID_PAD), lambda i: (0, 0)),      # b1: VMEM-resident
                pl.BlockSpec((HID_PAD, LANE), lambda i: (0, 0)),   # w2: VMEM-resident
                pl.BlockSpec((1, LANE), lambda i: (0, 0)),         # b2: VMEM-resident
            ],
            out_specs=pl.BlockSpec((TB, OUT), lambda i: (i, 0)),   # narrow output
        ),
        compiler_params=pltpu.CompilerParams(
            dimension_semantics=("parallel",),   # shards batch grid over 2 TCs on v7x
        ),
        cost_estimate=cost,
    )(x, w1p, b1p, w2p, b2p)
    return out
    # TODO(synk): if this head feeds an NLL loss / argmax, fuse that consumer
    # into the kernel (labels via scalar prefetch) to cut writeback to 4 B/row.


def _torch_linear_init(key, fan_in, fan_out):
    """Deterministic init mimicking torch.nn.Linear default U(-1/sqrt(fan_in), +)."""
    kw, kb = jax.random.split(key)
    bound = 1.0 / jnp.sqrt(fan_in)
    # Stored as [in, out] (transposed relative to torch's [out, in]).
    w = jax.random.uniform(kw, (fan_in, fan_out), jnp.float32, -bound, bound)
    b = jax.random.uniform(kb, (1, fan_out), jnp.float32, -bound, bound)
    return w, b


if __name__ == "__main__":
    key = jax.random.PRNGKey(0)
    k_x, k_fc1, k_fc2 = jax.random.split(key, 3)

    B = 8
    x = jax.random.normal(k_x, (B, IN_F), dtype=jnp.float32)

    w1, b1 = _torch_linear_init(k_fc1, IN_F, HID)
    w2, b2 = _torch_linear_init(k_fc2, HID, OUT)

    # Pad once at parameter-load time (offline, not per call).
    w1p, b1p, w2p, b2p = prepare_params(w1, b1, w2, b2)

    out = multi_lenet_o(x, w1p, b1p, w2p, b2p)
    out = jax.block_until_ready(out)

    # Pure-JAX reference check (same semantics as the torch forward).
    h_ref = jnp.maximum(x @ w1 + b1, 0.0)
    logits_ref = h_ref @ w2 + b2
    ref = jax.nn.log_softmax(logits_ref, axis=1)
    assert out.shape == (B, OUT)
    assert jnp.allclose(out, ref, atol=1e-5, rtol=1e-5), "mismatch vs reference"

    print("KERNEL_OK")
</pallas_src>

<mosaic_0001>
module attributes {stable_mosaic.version = 11 : i64} {
  func.func @multi_lenet_o_kernel(%arg0: i32, %arg1: memref<8x50xf32, #tpu.memory_space<vmem>>, %arg2: memref<50x64xf32, #tpu.memory_space<vmem>>, %arg3: memref<1x64xf32, #tpu.memory_space<vmem>>, %arg4: memref<64x128xf32, #tpu.memory_space<vmem>>, %arg5: memref<1x128xf32, #tpu.memory_space<vmem>>, %arg6: memref<8x10xf32, #tpu.memory_space<vmem>>) attributes {dimension_semantics = [#tpu.dimension_semantics<parallel>], iteration_bounds = array<i64: 1>, scalar_prefetch = 0 : i64, scratch_operands = 0 : i64, tpu.core_type = #tpu.core_type<tc>, window_params = [{transform_indices = @transform_0, window_bounds = array<i64: 8, 50>}, {pipeline_mode = #tpu.pipeline_mode<synchronous>, transform_indices = @transform_1, window_bounds = array<i64: 50, 64>}, {pipeline_mode = #tpu.pipeline_mode<synchronous>, transform_indices = @transform_2, window_bounds = array<i64: 1, 64>}, {pipeline_mode = #tpu.pipeline_mode<synchronous>, transform_indices = @transform_3, window_bounds = array<i64: 64, 128>}, {pipeline_mode = #tpu.pipeline_mode<synchronous>, transform_indices = @transform_4, window_bounds = array<i64: 1, 128>}, {transform_indices = @transform_5, window_bounds = array<i64: 8, 10>}]} {
    %c0 = arith.constant 0 : index
    %c0_0 = arith.constant 0 : index
    %0 = vector.load %arg1[%c0, %c0_0] : memref<8x50xf32, #tpu.memory_space<vmem>>, vector<8x50xf32>
    %c0_1 = arith.constant 0 : index
    %c0_2 = arith.constant 0 : index
    %1 = vector.load %arg2[%c0_1, %c0_2] : memref<50x64xf32, #tpu.memory_space<vmem>>, vector<50x64xf32>
    %cst = arith.constant dense<0.000000e+00> : vector<8x64xf32>
    %2 = tpu.matmul %0, %1, %cst {dimension_numbers = #tpu.dot_dimension_numbers<[1], [0], [0], [1], [0, 0, 1, 1], [], []>} : vector<8x50xf32>, vector<50x64xf32>, vector<8x64xf32> -> vector<8x64xf32>
    %c0_3 = arith.constant 0 : index
    %c0_4 = arith.constant 0 : index
    %3 = vector.load %arg3[%c0_3, %c0_4] : memref<1x64xf32, #tpu.memory_space<vmem>>, vector<1x64xf32>
    %4 = vector.broadcast %3 : vector<1x64xf32> to vector<8x64xf32>
    %5 = arith.addf %2, %4 : vector<8x64xf32>
    %cst_5 = arith.constant 0.000000e+00 : f32
    %6 = vector.broadcast %cst_5 : f32 to vector<8x64xf32>
    %7 = arith.maximumf %5, %6 : vector<8x64xf32>
    %c0_6 = arith.constant 0 : index
    %c0_7 = arith.constant 0 : index
    %8 = vector.load %arg4[%c0_6, %c0_7] : memref<64x128xf32, #tpu.memory_space<vmem>>, vector<64x128xf32>
    %cst_8 = arith.constant dense<0.000000e+00> : vector<8x128xf32>
    %9 = tpu.matmul %7, %8, %cst_8 {dimension_numbers = #tpu.dot_dimension_numbers<[1], [0], [0], [1], [0, 0, 1, 1], [], []>} : vector<8x64xf32>, vector<64x128xf32>, vector<8x128xf32> -> vector<8x128xf32>
    %c0_9 = arith.constant 0 : index
    %c0_10 = arith.constant 0 : index
    %10 = vector.load %arg5[%c0_9, %c0_10] : memref<1x128xf32, #tpu.memory_space<vmem>>, vector<1x128xf32>
    %11 = vector.broadcast %10 : vector<1x128xf32> to vector<8x128xf32>
    %12 = arith.addf %9, %11 : vector<8x128xf32>
    %cst_11 = arith.constant dense<0xFF800000> : vector<8xf32>
    %13 = vector.multi_reduction <maximumf>, %12, %cst_11 [1] : vector<8x128xf32> to vector<8xf32>
    %14 = vector.shape_cast %13 : vector<8xf32> to vector<8x1xf32>
    %15 = vector.broadcast %14 : vector<8x1xf32> to vector<8x128xf32>
    %16 = arith.subf %12, %15 : vector<8x128xf32>
    %17 = math.exp %16 : vector<8x128xf32>
    %cst_12 = arith.constant dense<0.000000e+00> : vector<8xf32>
    %18 = vector.multi_reduction <add>, %17, %cst_12 [1] : vector<8x128xf32> to vector<8xf32>
    %19 = vector.shape_cast %18 : vector<8xf32> to vector<8x1xf32>
    %20 = math.log %19 : vector<8x1xf32>
    %21 = vector.extract_strided_slice %16 {offsets = [0, 0], sizes = [8, 10], strides = [1, 1]} : vector<8x128xf32> to vector<8x10xf32>
    %22 = vector.broadcast %20 : vector<8x1xf32> to vector<8x10xf32>
    %23 = arith.subf %21, %22 : vector<8x10xf32>
    %c0_13 = arith.constant 0 : index
    %c0_14 = arith.constant 0 : index
    %24 = vector.load %arg6[%c0_13, %c0_14] : memref<8x10xf32, #tpu.memory_space<vmem>>, vector<8x10xf32>
    tpu.vector_store %arg6[%c0_13, %c0_14], %23 {strides = array<i32>} : memref<8x10xf32, #tpu.memory_space<vmem>>, vector<8x10xf32>,
    return
  }
  func.func @transform_0(%arg0: i32) -> (i32, i32) {
    %c0_i32 = arith.constant 0 : i32
    %c0_i32_0 = arith.constant 0 : i32
    return %arg0, %c0_i32 : i32, i32
  }
  func.func @transform_1(%arg0: i32) -> (i32, i32) {
    %c0_i32 = arith.constant 0 : i32
    %c0_i32_0 = arith.constant 0 : i32
    %c0_i32_1 = arith.constant 0 : i32
    return %c0_i32, %c0_i32_0 : i32, i32
  }
  func.func @transform_2(%arg0: i32) -> (i32, i32) {
    %c0_i32 = arith.constant 0 : i32
    %c0_i32_0 = arith.constant 0 : i32
    %c0_i32_1 = arith.constant 0 : i32
    return %c0_i32, %c0_i32_0 : i32, i32
  }
  func.func @transform_3(%arg0: i32) -> (i32, i32) {
    %c0_i32 = arith.constant 0 : i32
    %c0_i32_0 = arith.constant 0 : i32
    %c0_i32_1 = arith.constant 0 : i32
    return %c0_i32, %c0_i32_0 : i32, i32
  }
  func.func @transform_4(%arg0: i32) -> (i32, i32) {
    %c0_i32 = arith.constant 0 : i32
    %c0_i32_0 = arith.constant 0 : i32
    %c0_i32_1 = arith.constant 0 : i32
    return %c0_i32, %c0_i32_0 : i32, i32
  }
  func.func @transform_5(%arg0: i32) -> (i32, i32) {
    %c0_i32 = arith.constant 0 : i32
    %c0_i32_0 = arith.constant 0 : i32
    return %arg0, %c0_i32 : i32, i32
  }
}

</mosaic_0001>

<bundles_post_ra>
// kernel: multi_lenet_o.1
= control target key start
LH: loop header
LB: loop body
LE: loop exit
PB: predicated region body
PF: predicated region fallthrough
CT: control target
= control target key end

     0   :  { %10 = vsyncpa [#allocation3], 0  ;;  %s556_s0 = inlined_call_operand.hbm [shape: f32[8,50], index: 0, kind: input, shape index: {}]   ;;  %s557_s1 = inlined_call_operand.hbm [shape: f32[50,64], index: 1, kind: input, shape index: {}]   ;;  %s558_s2 = inlined_call_operand.vmem [shape: f32[1,64], index: 2, kind: input, shape index: {}]   ;;  %s559_s3 = inlined_call_operand.hbm [shape: f32[64,128], index: 3, kind: input, shape index: {}]   ;;  %s560_s4 = inlined_call_operand.vmem [shape: f32[1,128], index: 4, kind: input, shape index: {}]   ;;  %s561_s5 = inlined_call_operand.hbm [shape: f32[8,10], index: 5, kind: output, shape index: {}]  }
   0x1   :  { %11 = vsyncpa [#allocation6], 0 }
   0x2   :  { %12 = vsyncpa [#allocation4], 0  ;;  %s457_s18 = smov [#allocation5]   ;;  %s363_s22 = scalar_lea.hbm %s557_s1, 896 }
   0x3   :  { %s28_s19 = sshll.u32 %s457_s18, 4  ;;  %p364_p0 = scmp.ne.s32.totalorder %s557_s1, %s363_s22  ;;  %s29_s19 = int_to_ptr.vmem [resolvable:$true] %s28_s19 }
   0x4   :  { %p367_p1 = scmp.lt.u32.totalorder %s363_s22, %s557_s1 }
   0x6   :  { %p369_p2 = pnand %p367_p1, %p364_p0 }
   0x8   :  { %372 = shalt.err (!%p369_p2)
}
   0x9   :  { %s373_s27 = scalar_lea.vmem %s29_s19, 896  ;;  %p378_p4 = scmp.lt.s32.totalorder %s29_s19, %s29_s19 }
   0xa   :  { %p374_p3 = scmp.ne.s32.totalorder %s29_s19, %s373_s27  ;;  %p379_p5 = scmp.lt.s32.totalorder %s373_s27, %s373_s27 }
   0xc   :  { %p380_p6 = por %p379_p5, %p378_p4 }
   0xe   :  { %p381_p7 = pnand %p380_p6, %p374_p3 }
  0x10   :  { %384 = shalt.err (!%p381_p7)
}
  0x11   :  { %s458_s28 = smov 128   ;;  %s459_s29 = smov 8  }
  0x12   :  { %34 = dma.hbm_to_vmem [thread:$0]  %s557_s1, 896, %s29_s19, [#allocation6], %s458_s28, %s458_s28, %s459_s29  }
  0x13   :  { %s460_s7 = smov [#allocation2]   ;;  %s461_s9 = smov [#allocation7]  }
  0x14   :  { %s19_s8 = sshll.u32 %s460_s7, 4  ;;  %s42_s10 = sshll.u32 %s461_s9, 4  ;;  %s20_s8 = int_to_ptr.vmem [resolvable:$true] %s19_s8  ;;  %s43_s10 = int_to_ptr.vmem [resolvable:$true] %s42_s10 }
  0x15   :  { %s385_s13 = scalar_lea.hbm %s556_s0, 128 }
  0x16   :  { %p386_p8 = scmp.ne.s32.totalorder %s556_s0, %s385_s13  ;;  %p389_p9 = scmp.lt.u32.totalorder %s385_s13, %s556_s0 }
  0x18   :  { %p391_p10 = pnand %p389_p9, %p386_p8 }
  0x1a   :  { %394 = shalt.err (!%p391_p10)
}
  0x1b   :  { %s395_s1 = scalar_lea.vmem %s20_s8, 128  ;;  %p400_p12 = scmp.lt.s32.totalorder %s20_s8, %s20_s8 }
  0x1c   :  { %p396_p11 = scmp.ne.s32.totalorder %s20_s8, %s395_s1  ;;  %p401_p13 = scmp.lt.s32.totalorder %s395_s1, %s395_s1 }
  0x1e   :  { %p402_p0 = por %p401_p13, %p400_p12 }
  0x20   :  { %p403_p1 = pnand %p402_p0, %p396_p11 }
  0x22   :  { %406 = shalt.err (!%p403_p1)
}
  0x23   :  { %22 = dma.hbm_to_vmem [thread:$0]  %s556_s0, 128, %s20_s8, [#allocation3]  }
  0x24   :  { %s407_s22 = scalar_lea.hbm %s559_s3, 1024 }
  0x25   :  { %p408_p2 = scmp.ne.s32.totalorder %s559_s3, %s407_s22  ;;  %p411_p3 = scmp.lt.u32.totalorder %s407_s22, %s559_s3 }
  0x27   :  { %p413_p4 = pnand %p411_p3, %p408_p2 }
  0x29   :  { %416 = shalt.err (!%p413_p4)
}
  0x2a   :  { %s417_s27 = scalar_lea.vmem %s43_s10, 1024  ;;  %p422_p6 = scmp.lt.s32.totalorder %s43_s10, %s43_s10 }
  0x2b   :  { %p418_p5 = scmp.ne.s32.totalorder %s43_s10, %s417_s27  ;;  %p423_p7 = scmp.lt.s32.totalorder %s417_s27, %s417_s27 }
  0x2d   :  { %p424_p8 = por %p423_p7, %p422_p6 }
  0x2f   :  { %p425_p9 = pnand %p424_p8, %p418_p5 }
  0x31   :  { %428 = shalt.err (!%p425_p9)
}
  0x32   :  { %48 = dma.hbm_to_vmem [thread:$0]  %s559_s3, 1024, %s43_s10, [#allocation6], %s458_s28, %s458_s28, %s459_s29  }
  0x33   :  { %451 = dma.done.wait [#allocation3], 128  }
  0x34   :  { %452 = vsyncadd [#allocation3], 4294967168 }
  0x35   :  { %453 = dma.done.wait [#allocation6], 1920  }
  0x36   :  { %454 = vsyncadd [#allocation6], 4294965376  ;;  %v462_v0 = vmov 0.0|0.0   ;;  %vm463_vm0 = vmmov 0   ;;  %v464_v1 = vmov 0.0   ;;  %v61_v2 = vld [vmem:[#allocation5] sm:$0xff] }
  0x37   :  { %329 = vmatprep.subr.bf16.mxu0 %v462_v0  ;;  %307 = vmatprep.mubr.msk.f32.mxu0 %vm463_vm0, %v464_v1  ;;  %v62_v3 = vld [vmem:[#allocation5 + $0x8] sm:$0xff]  ;;  %v63_v4 = vld [vmem:[#allocation5 + $0x10] sm:$0xff]  ;;  %v64_v6 = vld [vmem:[#allocation5 + $0x18] sm:$0xff]  ;;  %vm79_vm1 = vcmask 1041408   ;;  %vm75_vm2 = vcmask 408576   ;;  %vm169_vm3 = vcmask 523264  }
  0x38   :  { %338 = vmatprep.subr.bf16.mxu1 %v462_v0  ;;  %326 = vmatprep.mubr.msk.f32.mxu1 %vm463_vm0, %v464_v1  ;;  %v330_v5 = vpack.c.bf16 %v62_v3, %v61_v2  ;;  %v154_v7 = vld [vmem:[#allocation7] sm:$0xff]  ;;  %v333_v8 = vpack.c.bf16 %v64_v6, %v63_v4  ;;  %v155_v9 = vld [vmem:[#allocation7 + $0x8] sm:$0xff]  ;;  %v156_v10 = vld [vmem:[#allocation7 + $0x10] sm:$0xff]  ;;  %vm253_vm4 = vcmask 80896  }
  0x39   :  { %v157_v11 = vld [vmem:[#allocation7 + $0x18] sm:$0xff]  ;;  %v65_v12 = vld [vmem:[#allocation5 + $0x20] sm:$0xff]  ;;  %v66_v13 = vld [vmem:[#allocation5 + $0x28] sm:$0xff]  ;;  %v339_v14 = vpack.c.bf16 %v155_v9, %v154_v7 }
  0x3a   :  { %331 = vmatpush3.bf16.msra.mxu0 %v330_v5  ;;  %v342_v15 = vpack.c.bf16 %v157_v11, %v156_v10  ;;  %v336_v16 = vpack.c.bf16 %v66_v13, %v65_v12  ;;  %v158_v17 = vld [vmem:[#allocation7 + $0x20] sm:$0xff]  ;;  %v159_v18 = vld [vmem:[#allocation7 + $0x28] sm:$0xff]  ;;  %v67_v20 = vld [vmem:[#allocation5 + $0x30] sm:$0x3] }
  0x3b   :  { %332 = vmatprep.subr.bf16.mxu0 %v462_v0  ;;  %340 = vmatpush3.bf16.msra.mxu1 %v339_v14  ;;  %v345_v19 = vpack.c.bf16 %v159_v18, %v158_v17  ;;  %v60_v21 = vld [vmem:[#allocation2] sm:$0xff]  ;;  %v160_v22 = vld [vmem:[#allocation7 + $0x30] sm:$0xff]  ;;  %v161_v23 = vld [vmem:[#allocation7 + $0x38] sm:$0xff] }
  0x3c   :  { %341 = vmatprep.subr.bf16.mxu1 %v462_v0  ;;  %v348_v24 = vpack.c.bf16 %v161_v23, %v160_v22  ;;  %v271_v25 = vld [vmem:[%s558_s2] ss:$0 sm:$0xff]  ;;  %s465_s2 = smov [#allocation8]  }
  0x3d   :  { %v274_v30 = vld [vmem:[%s560_s4] ss:$0 sm:$0xff]  ;;  %s261_s7 = sshll.u32 %s465_s2, 4  ;;  %s262_s7 = int_to_ptr.vmem [resolvable:$true] %s261_s7 }
  0x3e   :  { %334 = vmatpush3.bf16.msra.mxu0 %v333_v8  ;;  %s429_s4 = scalar_lea.vmem %s262_s7, 128  ;;  %p434_p11 = scmp.lt.s32.totalorder %s262_s7, %s262_s7 }
  0x3f   :  { %335 = vmatprep.subr.bf16.mxu0 %v462_v0  ;;  %343 = vmatpush3.bf16.msra.mxu1 %v342_v15  ;;  %p430_p10 = scmp.ne.s32.totalorder %s262_s7, %s429_s4  ;;  %p435_p12 = scmp.lt.s32.totalorder %s429_s4, %s429_s4 }
  0x40   :  { %344 = vmatprep.subr.bf16.mxu1 %v462_v0 }
  0x41   :  { %p436_p13 = por %p435_p12, %p434_p11 }
  0x42   :  { %337 = vmatpush3.bf16.msra.mxu0 %v336_v16 }
  0x43   :  { %305 = vmatprep.subr.mxu0 %v464_v1  ;;  %346 = vmatpush3.bf16.msra.mxu1 %v345_v19  ;;  %p437_p0 = pnand %p436_p13, %p430_p10 }
  0x44   :  { %347 = vmatprep.subr.bf16.mxu1 %v462_v0 }
  0x46   :  { %306 = vmatpush3.msk.msra.mxu0 %vm79_vm1, %v67_v20 }
  0x47   :  { %308 = vmatmul.mubr.msk.f32.vlgmr.msra.gmra.mrb[0].mxu0 %vm75_vm2, %v60_v21  ;;  %349 = vmatpush3.bf16.msra.mxu1 %v348_v24 }
 0x11a   :  { %v149_v26 = vpop.f32.mrb[0].mxu0 }
 0x11b   :  { %v150_v27 = vadd.f32 %v271_v25, %v149_v26  ;;  %v309_v28 = vpop.f32.mrb[1].mxu0 }
 0x11d   :  { %v153_v29 = vmax.f32 %v150_v27, 0.0 }
 0x11f   :  { %327 = vmatmul.mubr.msk.f32.vlgmr.msra.gmra.mrb[0].mxu1 %vm169_vm3, %v153_v29 }
 0x1f2   :  { %v239_v31 = vpop.f32.mrb[0].mxu1 }
 0x1f3   :  { %v240_v32 = vadd.f32 %v274_v30, %v239_v31  ;;  %v328_v33 = vpop.f32.mrb[1].mxu1 }
 0x1f5   :  { %243 = vmax.xlane.f32.xlu0 %v240_v32 }
 0x282   :  { %v244_v34 = vpop.xlane.xlu0 %243 }
 0x283   :  { %v245_v35 = vsub.f32 %v240_v32, %v244_v34 }
 0x285   :  { %v246_v36 = vmul.f32 1.442695, %v245_v35 }
 0x287   :  { %359 = vpow2.f32 %v246_v36 }
 0x291   :  { %v360_v37 = vpop.eup %359 }
 0x292   :  { %248 = vadd.xlane.f32.xlu0 %v360_v37 }
 0x31f   :  { %v249_v38 = vpop.xlane.xlu0 %248 }
 0x320   :  { %361 = vlog2.f32 %v249_v38 }
 0x32a   :  { %v362_v39 = vpop.eup %361 }
 0x32b   :  { %v251_v40 = vmul.f32 0.6931472, %v362_v39 }
 0x32d   :  { %v252_v41 = vsub.f32 %v245_v35, %v251_v40 }
 0x32f   :  { %254 = vst.msk [vmem:[#allocation8] sm:$0xff] %vm253_vm4, %v252_v41 }
 0x330   :  { %440 = shalt.err (!%p437_p0)
}
 0x331   :  { %s441_s10 = scalar_lea.hbm %s561_s5, 128 }
 0x332   :  { %p442_p1 = scmp.ne.s32.totalorder %s561_s5, %s441_s10  ;;  %p445_p2 = scmp.lt.u32.totalorder %s441_s10, %s561_s5 }
 0x334   :  { %p447_p3 = pnand %p445_p2, %p442_p1 }
 0x336   :  { %450 = shalt.err (!%p447_p3)
}
 0x337   :  { %264 = dma.vmem_to_hbm [thread:$0]  %s262_s7, 128, %s561_s5, [#allocation4]  }
 0x338   :  { %455 = dma.done.wait [#allocation4], 128  }
 0x339   :  { %456 = vsyncadd [#allocation4], 4294967168 }
 0x33a   :  { %268 = vsyncpa [#allocation3], 1 }
 0x33b   :  { %269 = vsyncpa [#allocation6], 1 }
 0x33c   :  { %270 = vsyncpa [#allocation4], 1 }

</bundles_post_ra>
